<compile_context>
chip_gen: v7x
topology: tpu7x:2x2x1
jax: 0.10.0
libtpu: 0.0.40
codegen_flags: <defaults>
</compile_context>

<pallas_src>
import functools

import jax
import jax.numpy as jnp
from jax.experimental import pallas as pl
from jax.experimental.pallas import tpu as pltpu

_MIB = 1024 * 1024


def _round_up(x, m):
    return ((x + m - 1) // m) * m


def _cdiv(a, b):
    return (a + b - 1) // b


# ---------------------------------------------------------------------------
# Kernel: one row tile of x (tm, E) @ resident weight (E, R_p) + bias (1, R_p)
# ---------------------------------------------------------------------------
def _linear_kernel(x_ref, w_ref, b_ref, o_ref, *, compute_dtype):
    x = x_ref[...]
    if compute_dtype is not None and x.dtype != jnp.dtype(compute_dtype):
        # In-kernel cast: avoids a separate wrapper-side astype pass over x in
        # HBM; the VPU cast is filler hidden under the streaming DMA.
        x = x.astype(compute_dtype)
    acc = jnp.dot(x, w_ref[...], preferred_element_type=jnp.float32)
    o_ref[...] = (acc + b_ref[...]).astype(o_ref.dtype)


# ---------------------------------------------------------------------------
# Generation-aware VMEM budget / tile choice
# ---------------------------------------------------------------------------
def _tpu_vmem_capacity_bytes():
    """Physical VMEM per core; conservative 64 MiB (v7x-class) if query fails."""
    try:
        info = pltpu.get_tpu_info()
        cap = int(getattr(info, "vmem_capacity_bytes", 0))
        if cap > 0:
            return cap
    except Exception:  # hardware probe only; never wraps the kernel call
        pass
    return 64 * _MIB


def _vmem_budget_and_limit():
    cap = _tpu_vmem_capacity_bytes()
    if cap <= 96 * _MIB:            # v7x-class: 64 MiB per TensorCore
        return 28 * _MIB, 40 * _MIB
    return 28 * _MIB, 48 * _MIB     # v5e / v6e: 128 MiB physical


def _estimate_vmem_bytes(tm, e, r_p, x_bytes, cast_bytes, w_bytes, o_bytes):
    return (2 * e * r_p * w_bytes        # resident weight (conservatively 2 bufs)
            + 2 * r_p * 4                # fp32 bias
            + 2 * tm * e * x_bytes       # streamed x tile, double-buffered
            + 2 * tm * r_p * o_bytes     # streamed out tile, double-buffered
            + tm * e * cast_bytes        # in-kernel bf16 cast temporary
            + tm * r_p * 4)              # fp32 accumulator temporary


def _choose_tile(m, e, r_p, x_bytes, cast_bytes, w_bytes, o_bytes, budget):
    """Largest row tile that fits the VMEM budget, clamped near M."""
    m_cap = _round_up(max(m, 1), 8)
    tm = 8
    for cand in (1024, 512, 256, 128, 64, 32, 16, 8):
        if cand == 1024 and _cdiv(m, cand) < 4:
            continue  # keep >= 2 grid steps per TensorCore (megacore balance)
        if _estimate_vmem_bytes(cand, e, r_p, x_bytes, cast_bytes,
                                w_bytes, o_bytes) <= budget:
            tm = cand
            break
    return min(tm, m_cap)   # both multiples of 8


# ---------------------------------------------------------------------------
# pallas_call wrapper
# ---------------------------------------------------------------------------
def _linear_pallas(x2d, w2d, b2d, out_dtype, tm, compute_dtype, vmem_limit):
    m, e = x2d.shape
    r_p = w2d.shape[1]

    kernel = functools.partial(_linear_kernel, compute_dtype=compute_dtype)

    cost = pl.CostEstimate(
        flops=2 * m * e * r_p,
        transcendentals=0,
        bytes_accessed=(x2d.size * x2d.dtype.itemsize
                        + w2d.size * w2d.dtype.itemsize
                        + b2d.size * b2d.dtype.itemsize
                        + m * r_p * jnp.dtype(out_dtype).itemsize),
    )

    return pl.pallas_call(
        kernel,
        out_shape=jax.ShapeDtypeStruct((m, r_p), out_dtype),
        grid=(_cdiv(m, tm),),
        in_specs=[
            pl.BlockSpec((tm, e), lambda i: (i, 0)),    # streamed row tile of x
            pl.BlockSpec((e, r_p), lambda i: (0, 0)),   # resident weight
            pl.BlockSpec((1, r_p), lambda i: (0, 0)),   # resident fp32 bias
        ],
        out_specs=pl.BlockSpec((tm, r_p), lambda i: (i, 0)),
        compiler_params=pltpu.CompilerParams(
            dimension_semantics=("parallel",),
            vmem_limit_bytes=int(vmem_limit),
        ),
        cost_estimate=cost,
    )(x2d, w2d, b2d)


def petune_forward(x, w_t, b, *, compute_dtype=None, out_dtype=None):
    """PETune forward: y = x @ W.T + b, with W stored transposed as (E, R).

    x: (B, N, E), w_t: (E, R), b: (R,) -> (B, N, R).
    compute_dtype: optional MXU input dtype (e.g. jnp.bfloat16); x is cast
      inside the kernel (no extra HBM pass), the small weight is cast here.
      Accumulation and the bias add stay fp32.
    out_dtype: result dtype (default x.dtype); bf16 halves writeback traffic.
    """
    B, N, E = x.shape
    E_w, R = w_t.shape
    assert E_w == E, "weight must be pre-transposed to (embed_dim, reduced_dim)"
    out_dtype = jnp.dtype(out_dtype) if out_dtype is not None else jnp.dtype(x.dtype)
    cdt = jnp.dtype(compute_dtype) if compute_dtype is not None else None

    M = B * N
    x2d = x.reshape(M, E)                                # layout-only view
    w2d = w_t if cdt is None else w_t.astype(cdt)        # tiny operand
    b2d = b.reshape(1, R).astype(jnp.float32)

    # Lane-dense output: pad only the small weight / bias to R_p (x is never
    # padded; its block uses the full E as last dim, exempt from the 128 rule).
    R_p = _round_up(R, 128)
    if R_p != R:
        w2d = jnp.pad(w2d, ((0, 0), (0, R_p - R)))
        b2d = jnp.pad(b2d, ((0, 0), (0, R_p - R)))

    budget, limit = _vmem_budget_and_limit()
    x_bytes = x2d.dtype.itemsize
    w_bytes = w2d.dtype.itemsize
    o_bytes = out_dtype.itemsize
    cast_bytes = cdt.itemsize if (cdt is not None and cdt != x2d.dtype) else 0
    tm = _choose_tile(M, E, R_p, x_bytes, cast_bytes, w_bytes, o_bytes, budget)

    out2d = _linear_pallas(x2d, w2d, b2d, out_dtype, tm, cdt, limit)

    if R_p != R:
        out2d = out2d[:, :R]
    return out2d.reshape(B, N, R)


def init_petune_params(key, embed_dim, scale_factor=1.0, dtype=jnp.float32):
    """Deterministic init mirroring nn.Linear(embed_dim, reduced_dim)."""
    reduced_dim = int(embed_dim / scale_factor)
    kw, kb = jax.random.split(key)
    bound = 1.0 / jnp.sqrt(jnp.asarray(embed_dim, dtype=jnp.float32))
    # PyTorch stores W as (reduced_dim, embed_dim); keep it transposed (E, R).
    w = jax.random.uniform(kw, (reduced_dim, embed_dim), dtype, -bound, bound)
    b = jax.random.uniform(kb, (reduced_dim,), dtype, -bound, bound)
    return w.T, b


if __name__ == "__main__":
    key = jax.random.PRNGKey(0)
    k_x, k_p = jax.random.split(key)

    # Small shapes consistent with the forward: (batch, num_patches, embed_dim)
    B, N, E = 2, 8, 32
    scale_factor = 1.0  # reduced_dim = E

    x = jax.random.normal(k_x, (B, N, E), jnp.float32)
    w_t, b = init_petune_params(k_p, E, scale_factor)

    # Plain-JAX reference.
    y_ref = (x.reshape(-1, E) @ w_t + b[None, :]).reshape(B, N, -1)

    # Default fp32 path.
    y = petune_forward(x, w_t, b)
    jax.block_until_ready(y)
    assert y.shape == (B, N, int(E / scale_factor))
    assert jnp.allclose(y, y_ref, atol=1e-4, rtol=1e-4)

    # bf16 MXU-input path (in-kernel cast, fp32 accumulation / bias add).
    y_bf16 = petune_forward(x, w_t, b, compute_dtype=jnp.bfloat16)
    jax.block_until_ready(y_bf16)
    assert y_bf16.dtype == x.dtype
    assert jnp.allclose(y_bf16, y_ref, atol=5e-2, rtol=5e-2)

    # bf16 output path (halved writeback traffic for tolerant consumers).
    y_bf16_out = petune_forward(x, w_t, b, compute_dtype=jnp.bfloat16,
                                out_dtype=jnp.bfloat16)
    jax.block_until_ready(y_bf16_out)
    assert y_bf16_out.dtype == jnp.bfloat16
    assert jnp.allclose(y_bf16_out.astype(jnp.float32), y_ref, atol=1e-1, rtol=1e-1)

    print("KERNEL_OK")
</pallas_src>

<mosaic_0001>
module attributes {stable_mosaic.version = 11 : i64} {
  func.func @_linear_kernel(%arg0: i32, %arg1: memref<16x32xf32, #tpu.memory_space<vmem>>, %arg2: memref<32x128xf32, #tpu.memory_space<vmem>>, %arg3: memref<1x128xf32, #tpu.memory_space<vmem>>, %arg4: memref<16x128xf32, #tpu.memory_space<vmem>>) attributes {dimension_semantics = [#tpu.dimension_semantics<parallel>], iteration_bounds = array<i64: 1>, scalar_prefetch = 0 : i64, scratch_operands = 0 : i64, tpu.core_type = #tpu.core_type<tc>, window_params = [{transform_indices = @transform_0, window_bounds = array<i64: 16, 32>}, {pipeline_mode = #tpu.pipeline_mode<synchronous>, transform_indices = @transform_1, window_bounds = array<i64: 32, 128>}, {pipeline_mode = #tpu.pipeline_mode<synchronous>, transform_indices = @transform_2, window_bounds = array<i64: 1, 128>}, {transform_indices = @transform_3, window_bounds = array<i64: 16, 128>}]} {
    %c0 = arith.constant 0 : index
    %c0_0 = arith.constant 0 : index
    %0 = vector.load %arg1[%c0, %c0_0] : memref<16x32xf32, #tpu.memory_space<vmem>>, vector<16x32xf32>
    %c0_1 = arith.constant 0 : index
    %c0_2 = arith.constant 0 : index
    %1 = vector.load %arg2[%c0_1, %c0_2] : memref<32x128xf32, #tpu.memory_space<vmem>>, vector<32x128xf32>
    %cst = arith.constant dense<0.000000e+00> : vector<16x128xf32>
    %2 = tpu.matmul %0, %1, %cst {dimension_numbers = #tpu.dot_dimension_numbers<[1], [0], [0], [1], [0, 0, 1, 1], [], []>} : vector<16x32xf32>, vector<32x128xf32>, vector<16x128xf32> -> vector<16x128xf32>
    %c0_3 = arith.constant 0 : index
    %c0_4 = arith.constant 0 : index
    %3 = vector.load %arg3[%c0_3, %c0_4] : memref<1x128xf32, #tpu.memory_space<vmem>>, vector<1x128xf32>
    %4 = vector.broadcast %3 : vector<1x128xf32> to vector<16x128xf32>
    %5 = arith.addf %2, %4 : vector<16x128xf32>
    %c0_5 = arith.constant 0 : index
    %c0_6 = arith.constant 0 : index
    %6 = vector.load %arg4[%c0_5, %c0_6] : memref<16x128xf32, #tpu.memory_space<vmem>>, vector<16x128xf32>
    tpu.vector_store %arg4[%c0_5, %c0_6], %5 {strides = array<i32>} : memref<16x128xf32, #tpu.memory_space<vmem>>, vector<16x128xf32>,
    return
  }
  func.func @transform_0(%arg0: i32) -> (i32, i32) {
    %c0_i32 = arith.constant 0 : i32
    %c0_i32_0 = arith.constant 0 : i32
    return %arg0, %c0_i32 : i32, i32
  }
  func.func @transform_1(%arg0: i32) -> (i32, i32) {
    %c0_i32 = arith.constant 0 : i32
    %c0_i32_0 = arith.constant 0 : i32
    %c0_i32_1 = arith.constant 0 : i32
    return %c0_i32, %c0_i32_0 : i32, i32
  }
  func.func @transform_2(%arg0: i32) -> (i32, i32) {
    %c0_i32 = arith.constant 0 : i32
    %c0_i32_0 = arith.constant 0 : i32
    %c0_i32_1 = arith.constant 0 : i32
    return %c0_i32, %c0_i32_0 : i32, i32
  }
  func.func @transform_3(%arg0: i32) -> (i32, i32) {
    %c0_i32 = arith.constant 0 : i32
    %c0_i32_0 = arith.constant 0 : i32
    return %arg0, %c0_i32 : i32, i32
  }
}

</mosaic_0001>

<bundles_post_ra>
// kernel: tpu_custom_call.1
= control target key start
LH: loop header
LB: loop body
LE: loop exit
PB: predicated region body
PF: predicated region fallthrough
CT: control target
= control target key end

     0   :  { %8 = vsyncpa [#allocation3], 0  ;;  %s336_s0 = inlined_call_operand.hbm [shape: f32[16,32], index: 0, kind: input, shape index: {}]   ;;  %s337_s1 = inlined_call_operand.hbm [shape: f32[32,128], index: 1, kind: input, shape index: {}]   ;;  %s338_s2 = inlined_call_operand.vmem [shape: f32[1,128], index: 2, kind: input, shape index: {}]   ;;  %s339_s3 = inlined_call_operand.hbm [shape: f32[16,128], index: 3, kind: output, shape index: {}]  }
   0x1   :  { %9 = vsyncpa [#allocation6], 0 }
   0x2   :  { %10 = vsyncpa [#allocation4], 0  ;;  %s263_s12 = smov [#allocation2]   ;;  %s191_s16 = scalar_lea.hbm %s336_s0, 256 }
   0x3   :  { %s16_s13 = sshll.u32 %s263_s12, 4  ;;  %p192_p0 = scmp.ne.s32.totalorder %s336_s0, %s191_s16  ;;  %s17_s13 = int_to_ptr.vmem [resolvable:$true] %s16_s13 }
   0x4   :  { %p195_p1 = scmp.lt.u32.totalorder %s191_s16, %s336_s0 }
   0x6   :  { %p197_p2 = pnand %p195_p1, %p192_p0 }
   0x8   :  { %200 = shalt.err (!%p197_p2)
}
   0x9   :  { %s201_s21 = scalar_lea.vmem %s17_s13, 256  ;;  %p206_p4 = scmp.lt.s32.totalorder %s17_s13, %s17_s13 }
   0xa   :  { %p202_p3 = scmp.ne.s32.totalorder %s17_s13, %s201_s21  ;;  %p207_p5 = scmp.lt.s32.totalorder %s201_s21, %s201_s21 }
   0xc   :  { %p208_p6 = por %p207_p5, %p206_p4 }
   0xe   :  { %p209_p7 = pnand %p208_p6, %p202_p3 }
  0x10   :  { %212 = shalt.err (!%p209_p7)
}
  0x11   :  { %s264_s22 = smov 128   ;;  %s265_s23 = smov 8  }
  0x12   :  { %22 = dma.hbm_to_vmem [thread:$0]  %s336_s0, 256, %s17_s13, [#allocation3], %s264_s22, %s264_s22, %s265_s23  }
  0x13   :  { %s266_s26 = smov [#allocation5]   ;;  %s213_s30 = scalar_lea.hbm %s337_s1, 512 }
  0x14   :  { %s28_s27 = sshll.u32 %s266_s26, 4  ;;  %p214_p8 = scmp.ne.s32.totalorder %s337_s1, %s213_s30  ;;  %s29_s27 = int_to_ptr.vmem [resolvable:$true] %s28_s27 }
  0x15   :  { %p217_p9 = scmp.lt.u32.totalorder %s213_s30, %s337_s1 }
  0x17   :  { %p219_p10 = pnand %p217_p9, %p214_p8 }
  0x19   :  { %222 = shalt.err (!%p219_p10)
}
  0x1a   :  { %s223_s8 = scalar_lea.vmem %s29_s27, 512  ;;  %p228_p12 = scmp.lt.s32.totalorder %s29_s27, %s29_s27 }
  0x1b   :  { %p224_p11 = scmp.ne.s32.totalorder %s29_s27, %s223_s8  ;;  %p229_p13 = scmp.lt.s32.totalorder %s223_s8, %s223_s8 }
  0x1d   :  { %p230_p0 = por %p229_p13, %p228_p12 }
  0x1f   :  { %p231_p1 = pnand %p230_p0, %p224_p11 }
  0x21   :  { %234 = shalt.err (!%p231_p1)
}
  0x22   :  { %34 = dma.hbm_to_vmem [thread:$0]  %s337_s1, 512, %s29_s27, [#allocation6], %s264_s22, %s264_s22, %s265_s23  }
  0x23   :  { %257 = dma.done.wait [#allocation3], 256  }
  0x24   :  { %258 = vsyncadd [#allocation3], 4294967040 }
  0x25   :  { %259 = dma.done.wait [#allocation6], 512  }
  0x26   :  { %260 = vsyncadd [#allocation6], 4294966784  ;;  %vm56_vm0 = vcmask 261120   ;;  %v45_v0 = vld [vmem:[#allocation5] sm:$0xff]  ;;  %v46_v1 = vld [vmem:[#allocation5 + $0x8] sm:$0xff]  ;;  %s267_s11 = smov [#allocation7]  }
  0x27   :  { %v47_v2 = vld [vmem:[#allocation5 + $0x10] sm:$0xff]  ;;  %v178_v3 = vpack.c.bf16 %v46_v1, %v45_v0  ;;  %v48_v4 = vld [vmem:[#allocation5 + $0x18] sm:$0xff]  ;;  %s145_s12 = sshll.u32 %s267_s11, 4  ;;  %s146_s12 = int_to_ptr.vmem [resolvable:$true] %s145_s12 }
  0x28   :  { %v43_v5 = vld [vmem:[#allocation2] sm:$0xff]  ;;  %v182_v6 = vpack.c.bf16 %v48_v4, %v47_v2  ;;  %v44_v7 = vld [vmem:[#allocation2 + $0x8] sm:$0xff]  ;;  %s235_s13 = scalar_lea.vmem %s146_s12, 256  ;;  %p240_p3 = scmp.lt.s32.totalorder %s146_s12, %s146_s12 }
  0x29   :  { %175 = vmatprep.mubr.msk.f32.mxu0 %vm56_vm0, %v43_v5  ;;  %179 = vmatprep.subr.bf16.mxu0 %v178_v3  ;;  %v158_v8 = vld [vmem:[%s338_s2] ss:$0 sm:$0xff]  ;;  %p236_p2 = scmp.ne.s32.totalorder %s146_s12, %s235_s13  ;;  %p241_p4 = scmp.lt.s32.totalorder %s235_s13, %s235_s13 }
  0x2a   :  { %181 = vmatpush3.bf16.msra.mxu0 %v178_v3 }
  0x2b   :  { %183 = vmatprep.subr.bf16.mxu0 %v182_v6  ;;  %p242_p5 = por %p241_p4, %p240_p3 }
  0x2d   :  { %p243_p6 = pnand %p242_p5, %p236_p2 }
  0x2e   :  { %185 = vmatpush3.bf16.msra.mxu0 %v182_v6 }
  0x31   :  { %176 = vmatmul.mubr.msk.f32.vlgmr.msra.gmra.mrb[0].mxu0 %vm56_vm0, %v44_v7 }
 0x104   :  { %v177_v9 = vpop.f32.mrb[0].mxu0 }
 0x105   :  { %v135_v10 = vadd.f32 %v177_v9, %v158_v8  ;;  %v129_v11 = vpop.f32.mrb[1].mxu0 }
 0x106   :  { %v130_v12 = vadd.f32 %v158_v8, %v129_v11 }
 0x107   :  { %139 = vst [vmem:[#allocation7 + $0x8] sm:$0xff] %v135_v10 }
 0x108   :  { %138 = vst [vmem:[#allocation7] sm:$0xff] %v130_v12 }
 0x109   :  { %246 = shalt.err (!%p243_p6)
}
 0x10a   :  { %s247_s2 = scalar_lea.hbm %s339_s3, 256 }
 0x10b   :  { %p248_p7 = scmp.ne.s32.totalorder %s339_s3, %s247_s2  ;;  %p251_p8 = scmp.lt.u32.totalorder %s247_s2, %s339_s3 }
 0x10d   :  { %p253_p9 = pnand %p251_p8, %p248_p7 }
 0x10f   :  { %256 = shalt.err (!%p253_p9)
}
 0x110   :  { %151 = dma.vmem_to_hbm [thread:$0]  %s146_s12, 256, %s339_s3, [#allocation4], %s264_s22, %s264_s22, %s265_s23  }
 0x111   :  { %261 = dma.done.wait [#allocation4], 256  }
 0x112   :  { %262 = vsyncadd [#allocation4], 4294967040 }
 0x113   :  { %155 = vsyncpa [#allocation3], 1 }
 0x114   :  { %156 = vsyncpa [#allocation6], 1 }
 0x115   :  { %157 = vsyncpa [#allocation4], 1 }

</bundles_post_ra>
